<compile_context>
chip_gen: v7x
topology: tpu7x:2x2x1
jax: 0.10.0
libtpu: 0.0.40
codegen_flags: <defaults>
</compile_context>

<pallas_src>
import functools

import jax
import jax.numpy as jnp
from jax.experimental import pallas as pl
from jax.experimental.pallas import tpu as pltpu


# ---------------------------------------------------------------------------
# Kernels
# ---------------------------------------------------------------------------
def _fc_kernel_single(x_ref, w_ref, b_ref, o_ref):
    """nk == 1: whole contraction in one MXU call, fused epilogue, no scratch."""
    y = jnp.dot(x_ref[...], w_ref[...], preferred_element_type=jnp.float32)
    y = y + b_ref[...].astype(jnp.float32)
    # F.normalize(y, p=2, dim=1), eps=1e-12:
    #   y / max(||y||_2, 1e-12) == y * rsqrt(max(sum(y^2), 1e-24))
    sq = jnp.sum(y * y, axis=1, keepdims=True)
    inv = jax.lax.rsqrt(jnp.maximum(sq, 1e-24))
    o_ref[...] = (y * inv).astype(o_ref.dtype)


def _fc_kernel_ktiled_inplace(x_ref, w_ref, b_ref, o_ref):
    """nk > 1, f32 output: accumulate straight into the resident output block."""
    k = pl.program_id(1)

    @pl.when(k == 0)
    def _init():
        # Fold the bias into the accumulator init (write happens anyway).
        o_ref[...] = jnp.broadcast_to(b_ref[...].astype(jnp.float32), o_ref.shape)

    o_ref[...] += jnp.dot(x_ref[...], w_ref[...],
                          preferred_element_type=jnp.float32)

    @pl.when(k == pl.num_programs(1) - 1)
    def _epilogue():
        y = o_ref[...]
        sq = jnp.sum(y * y, axis=1, keepdims=True)
        inv = jax.lax.rsqrt(jnp.maximum(sq, 1e-24))
        o_ref[...] = y * inv


def _fc_kernel_ktiled_scratch(x_ref, w_ref, b_ref, o_ref, acc_ref):
    """nk > 1, non-f32 output: f32 accumulator scratch, cast on final store."""
    k = pl.program_id(1)

    @pl.when(k == 0)
    def _init():
        acc_ref[...] = jnp.broadcast_to(b_ref[...].astype(jnp.float32),
                                        acc_ref.shape)

    acc_ref[...] += jnp.dot(x_ref[...], w_ref[...],
                            preferred_element_type=jnp.float32)

    @pl.when(k == pl.num_programs(1) - 1)
    def _epilogue():
        y = acc_ref[...]
        sq = jnp.sum(y * y, axis=1, keepdims=True)
        inv = jax.lax.rsqrt(jnp.maximum(sq, 1e-24))
        o_ref[...] = (y * inv).astype(o_ref.dtype)


# ---------------------------------------------------------------------------
# Generation-aware VMEM heuristics
# ---------------------------------------------------------------------------
@functools.lru_cache(maxsize=1)
def _tpu_vmem_bytes():
    try:
        info = pltpu.get_tpu_info()
        vmem = int(getattr(info, "vmem_capacity_bytes"))
        if vmem > 0:
            return vmem
    except Exception:
        pass
    return 64 * 1024 * 1024          # conservative (v7x per-TC) fallback


def _resident_weight_threshold_bytes():
    # v5e/v6e (128 MiB VMEM): keep weights up to 48 MiB fully resident and
    # avoid K-tiling entirely.  v7x (64 MiB VMEM per TC): cap at 12 MiB.
    return (48 << 20) if _tpu_vmem_bytes() >= (96 << 20) else (12 << 20)


def _default_vmem_limit_bytes():
    return (96 << 20) if _tpu_vmem_bytes() >= (96 << 20) else (48 << 20)


# ---------------------------------------------------------------------------
# Parameter prep (one-time; do NOT call per forward)
# ---------------------------------------------------------------------------
def fc_layer_prepare_params(weight, bias, *, param_dtype=None,
                            k_pad_threshold_bytes=8 << 20):
    """weight: [out_f, in_f] (nn.Linear layout), bias: [out_f] or None.

    Returns (w_t, bias2d, out_features):
      w_t    : [in_f_padded, out_f_padded]  transposed; out dim zero-padded to
               a lane-dense multiple of 128; K zero-padded to a multiple of 512
               only when the weight is large enough to ever be K-tiled.
      bias2d : [1, out_f_padded]
    Zero-padded output columns add 0 to the per-row L2 norm and zero-padded K
    rows add 0 to the dot product, so valid entries match exactly.
    `param_dtype=jnp.bfloat16` pre-casts the parameters for MXU-native serving
    (accumulation / normalization stay f32 inside the kernel).
    """
    out_f, in_f = weight.shape
    w_t = jnp.asarray(weight).T
    b = (jnp.asarray(bias) if bias is not None
         else jnp.zeros((out_f,), dtype=w_t.dtype))
    if param_dtype is not None:
        w_t = w_t.astype(param_dtype)
        b = b.astype(param_dtype)

    pad_n = (-out_f) % 128                       # lane-dense output stores
    if pad_n:
        w_t = jnp.pad(w_t, ((0, 0), (0, pad_n)))
        b = jnp.pad(b, (0, pad_n))

    out_fp = out_f + pad_n
    # Pad K only for weights that may need K-tiling (guarantees a 256-aligned
    # tk that divides K, closing the old "fall back to tk=in_f" VMEM hole).
    if in_f * out_fp * w_t.dtype.itemsize > k_pad_threshold_bytes:
        pad_k = (-in_f) % 512
        if pad_k:
            w_t = jnp.pad(w_t, ((0, pad_k), (0, 0)))
    return w_t, b.reshape(1, -1), out_f


# ---------------------------------------------------------------------------
# Tiling heuristics
# ---------------------------------------------------------------------------
def _pick_tk(in_f, out_fp, itemsize):
    """Full-K (resident weight) when it fits the generation's budget;
    otherwise a 256-aligned K tile whose (tk, out_fp) slab stays small."""
    if in_f * out_fp * itemsize <= _resident_weight_threshold_bytes():
        return in_f
    slab_budget = 4 << 20                        # per weight slab (x2 buffers)
    tk = max((slab_budget // (out_fp * itemsize)) // 256 * 256, 256)
    tk = min(tk, in_f)
    while tk > 256 and in_f % tk != 0:
        tk -= 256
    if in_f % tk != 0:
        # prepare_params pads K to 512 for any weight this large, so this is
        # defensive only.
        tk = 128 if in_f % 128 == 0 else in_f
    return tk


def _vmem_footprint(tb, tk, in_f, out_fp, x_isz, w_isz, out_isz, use_scratch):
    w_bufs = 1 if tk == in_f else 2
    f = 2 * tb * tk * x_isz                      # x, double-buffered
    f += w_bufs * tk * out_fp * w_isz            # weight slab(s)
    f += 2 * out_fp * w_isz                      # bias
    f += 2 * tb * out_fp * out_isz               # output, double-buffered
    if use_scratch:
        f += tb * out_fp * 4                     # f32 accumulator
    return f


def _round_tile_dim(t, full):
    """A valid second-to-last block dim: the full extent, or a multiple of 8."""
    if t >= full:
        return full
    return max((t // 8) * 8, 8)


def _select_tb(tb_req, B, tk, in_f, out_fp, x_isz, w_isz, out_isz,
               use_scratch, vmem_budget):
    tb = min(tb_req, B)
    # Keep >= 2 batch tiles when the batch allows it (v7x megacore shards the
    # 'parallel' batch axis across its two TensorCores).
    if B >= 256 and pl.cdiv(B, tb) < 2:
        tb = ((pl.cdiv(B, 2) + 127) // 128) * 128
    # Cap by actual VMEM footprint (v7x = 64 MiB per TC).
    while tb > 128 and _vmem_footprint(tb, tk, in_f, out_fp, x_isz, w_isz,
                                       out_isz, use_scratch) > vmem_budget:
        tb = max(tb // 2, 128)
    return _round_tile_dim(tb, B)


# ---------------------------------------------------------------------------
# Forward
# ---------------------------------------------------------------------------
def fc_layer_forward(x, w_t, bias2d, out_features=None, *, tb=256, tk=None,
                     vmem_limit_bytes=None):
    """x: [B, in_f]; w_t: [in_fp, out_fp] pre-transposed/padded; bias2d: [1, out_fp]."""
    B, in_f_x = x.shape
    in_f, out_fp = w_t.shape
    if in_f_x != in_f:
        # K was zero-padded in prepare_params; pad x's features to match.
        assert in_f_x < in_f and in_f - in_f_x < 512, \
            "weight/input feature mismatch"
        x = jnp.pad(x, ((0, 0), (0, in_f - in_f_x)))
    assert bias2d.shape == (1, out_fp), "bias shape mismatch"

    if vmem_limit_bytes is None:
        vmem_limit_bytes = _default_vmem_limit_bytes()

    if tk is None:
        tk = _pick_tk(in_f, out_fp, w_t.dtype.itemsize)
    elif tk < in_f and in_f % tk != 0:
        raise ValueError("tk must divide the (padded) in_features")
    tk = min(tk, in_f)
    nk = pl.cdiv(in_f, tk)

    out_dtype = x.dtype
    use_scratch = (nk > 1) and (out_dtype != jnp.float32)
    out_isz = jnp.dtype(out_dtype).itemsize

    tb = _select_tb(tb, B, tk, in_f, out_fp, x.dtype.itemsize,
                    w_t.dtype.itemsize, out_isz, use_scratch,
                    vmem_budget=vmem_limit_bytes - (8 << 20))
    nb = pl.cdiv(B, tb)

    # Accurate HBM-traffic hint: when K is tiled the weight is re-streamed
    # once per batch tile.
    weight_reads = nb if nk > 1 else 1
    cost = pl.CostEstimate(
        flops=2 * B * in_f * out_fp,
        transcendentals=B,                       # one rsqrt per row
        bytes_accessed=(x.size * x.dtype.itemsize
                        + weight_reads * w_t.size * w_t.dtype.itemsize
                        + bias2d.size * bias2d.dtype.itemsize
                        + B * out_fp * out_isz))

    if nk == 1:
        # --- fast path: no accumulator, fused epilogue, 1-D batch grid ---
        kernel = _fc_kernel_single
        grid = (nb,)
        in_specs = [
            pl.BlockSpec((tb, tk), lambda i: (i, 0)),
            pl.BlockSpec((tk, out_fp), lambda i: (0, 0),
                         pipeline_mode=pl.Buffered(1)),   # fetched once
            pl.BlockSpec((1, out_fp), lambda i: (0, 0),
                         pipeline_mode=pl.Buffered(1)),
        ]
        out_specs = pl.BlockSpec((tb, out_fp), lambda i: (i, 0))
        scratch_shapes = []
        dim_sem = ("parallel",)
    else:
        # --- K-tiled reduction (K last in grid) ---
        kernel = (_fc_kernel_ktiled_scratch if use_scratch
                  else _fc_kernel_ktiled_inplace)
        grid = (nb, nk)
        in_specs = [
            pl.BlockSpec((tb, tk), lambda i, k: (i, k)),
            pl.BlockSpec((tk, out_fp), lambda i, k: (k, 0)),
            pl.BlockSpec((1, out_fp), lambda i, k: (0, 0),
                         pipeline_mode=pl.Buffered(1)),
        ]
        out_specs = pl.BlockSpec((tb, out_fp), lambda i, k: (i, 0))
        scratch_shapes = ([pltpu.VMEM((tb, out_fp), jnp.float32)]
                          if use_scratch else [])
        dim_sem = ("parallel", "arbitrary")
        # TODO(synk): on v7x, an in-kernel fori_loop over a VMEM-resident
        # weight slab could keep partial sums in the MRB instead of the
        # grid-level accumulator; not restructured here.

    out = pl.pallas_call(
        kernel,
        out_shape=jax.ShapeDtypeStruct((B, out_fp), out_dtype),
        grid_spec=pltpu.PrefetchScalarGridSpec(
            num_scalar_prefetch=0,
            grid=grid,
            in_specs=in_specs,
            out_specs=out_specs,
            scratch_shapes=scratch_shapes,
        ),
        compiler_params=pltpu.CompilerParams(
            dimension_semantics=dim_sem,
            vmem_limit_bytes=vmem_limit_bytes),
        cost_estimate=cost,
    )(x, w_t, bias2d)

    if out_features is not None and out_features != out_fp:
        out = out[:, :out_features]              # drop lane-padding columns
    return out


# ---------------------------------------------------------------------------
# Reference + tests
# ---------------------------------------------------------------------------
def fc_layer_reference(x, weight, bias):
    y = (x.astype(jnp.float32) @ weight.T.astype(jnp.float32)
         + bias.astype(jnp.float32)[None, :])
    norm = jnp.sqrt(jnp.sum(y * y, axis=1, keepdims=True))
    return y / jnp.maximum(norm, 1e-12)


if __name__ == "__main__":
    key = jax.random.PRNGKey(0)
    k_x, k_w, k_b, k_x2, k_w2, k_b2 = jax.random.split(key, 6)

    # ---- main check: f32, lane-dense out_features, >=2 batch grid steps ----
    batch, in_features, out_features = 256, 256, 128
    x = jax.random.normal(k_x, (batch, in_features), dtype=jnp.float32)
    bound = 1.0 / (in_features ** 0.5)
    weight = jax.random.uniform(k_w, (out_features, in_features),
                                minval=-bound, maxval=bound, dtype=jnp.float32)
    bias = jax.random.uniform(k_b, (out_features,),
                              minval=-bound, maxval=bound, dtype=jnp.float32)

    w_t, b2, out_f = fc_layer_prepare_params(weight, bias)   # one-time prep
    out = jax.block_until_ready(fc_layer_forward(x, w_t, b2, out_f))
    ref = fc_layer_reference(x, weight, bias)
    assert out.shape == (batch, out_features)
    assert jnp.allclose(out, ref, atol=1e-5, rtol=1e-5), "f32 mismatch"

    # ---- bf16 params/inputs straight to the MXU (f32 accumulate in-kernel) ----
    xb = x.astype(jnp.bfloat16)
    w_tb, b2b, _ = fc_layer_prepare_params(weight, bias,
                                           param_dtype=jnp.bfloat16)
    out_bf16 = jax.block_until_ready(fc_layer_forward(xb, w_tb, b2b, out_f))
    ref_bf16 = fc_layer_reference(xb, weight.astype(jnp.bfloat16),
                                  bias.astype(jnp.bfloat16))
    assert out_bf16.dtype == jnp.bfloat16
    assert jnp.allclose(out_bf16.astype(jnp.float32), ref_bf16,
                        atol=2e-2, rtol=2e-2), "bf16 mismatch"

    # ---- forced K-tiled paths (nk=2): f32 in-place acc + bf16 scratch acc ----
    out_kt = jax.block_until_ready(fc_layer_forward(x, w_t, b2, out_f, tk=128))
    assert jnp.allclose(out_kt, ref, atol=1e-5, rtol=1e-5), "k-tiled f32 mismatch"
    out_kt_bf = jax.block_until_ready(
        fc_layer_forward(xb, w_tb, b2b, out_f, tk=128))
    assert jnp.allclose(out_kt_bf.astype(jnp.float32), ref_bf16,
                        atol=2e-2, rtol=2e-2), "k-tiled bf16 mismatch"

    # ---- ragged batch + non-128 out_features (padded lane-dense, sliced) ----
    b3, in3, out3 = 200, 384, 96
    x3 = jax.random.normal(k_x2, (b3, in3), dtype=jnp.float32)
    bound3 = 1.0 / (in3 ** 0.5)
    w3 = jax.random.uniform(k_w2, (out3, in3), minval=-bound3, maxval=bound3,
                            dtype=jnp.float32)
    bias3 = jax.random.uniform(k_b2, (out3,), minval=-bound3, maxval=bound3,
                               dtype=jnp.float32)
    w_t3, b2_3, out_f3 = fc_layer_prepare_params(w3, bias3)
    out3_k = jax.block_until_ready(fc_layer_forward(x3, w_t3, b2_3, out_f3))
    ref3 = fc_layer_reference(x3, w3, bias3)
    assert out3_k.shape == (b3, out3)
    assert jnp.allclose(out3_k, ref3, atol=1e-5, rtol=1e-5), "padded mismatch"

    print("KERNEL_OK")
</pallas_src>

<mosaic_0001>
module attributes {stable_mosaic.version = 11 : i64} {
  func.func @_fc_kernel_single(%arg0: i32, %arg1: memref<128x256xf32, #tpu.memory_space<vmem>>, %arg2: memref<256x128xf32, #tpu.memory_space<vmem>>, %arg3: memref<1x128xf32, #tpu.memory_space<vmem>>, %arg4: memref<128x128xf32, #tpu.memory_space<vmem>>) attributes {dimension_semantics = [#tpu.dimension_semantics<parallel>], iteration_bounds = array<i64: 2>, scalar_prefetch = 0 : i64, scratch_operands = 0 : i64, tpu.core_type = #tpu.core_type<tc>, window_params = [{transform_indices = @transform_0, window_bounds = array<i64: 128, 256>}, {pipeline_mode = #tpu.pipeline_mode<synchronous>, transform_indices = @transform_1, window_bounds = array<i64: 256, 128>}, {pipeline_mode = #tpu.pipeline_mode<synchronous>, transform_indices = @transform_2, window_bounds = array<i64: 1, 128>}, {transform_indices = @transform_3, window_bounds = array<i64: 128, 128>}]} {
    %c0 = arith.constant 0 : index
    %c0_0 = arith.constant 0 : index
    %0 = vector.load %arg1[%c0, %c0_0] : memref<128x256xf32, #tpu.memory_space<vmem>>, vector<128x256xf32>
    %c0_1 = arith.constant 0 : index
    %c0_2 = arith.constant 0 : index
    %1 = vector.load %arg2[%c0_1, %c0_2] : memref<256x128xf32, #tpu.memory_space<vmem>>, vector<256x128xf32>
    %cst = arith.constant dense<0.000000e+00> : vector<128x128xf32>
    %2 = tpu.matmul %0, %1, %cst {dimension_numbers = #tpu.dot_dimension_numbers<[1], [0], [0], [1], [0, 0, 1, 1], [], []>} : vector<128x256xf32>, vector<256x128xf32>, vector<128x128xf32> -> vector<128x128xf32>
    %c0_3 = arith.constant 0 : index
    %c0_4 = arith.constant 0 : index
    %3 = vector.load %arg3[%c0_3, %c0_4] : memref<1x128xf32, #tpu.memory_space<vmem>>, vector<1x128xf32>
    %4 = vector.broadcast %3 : vector<1x128xf32> to vector<128x128xf32>
    %5 = arith.addf %2, %4 : vector<128x128xf32>
    %6 = arith.mulf %5, %5 : vector<128x128xf32>
    %cst_5 = arith.constant dense<0.000000e+00> : vector<128xf32>
    %7 = vector.multi_reduction <add>, %6, %cst_5 [1] : vector<128x128xf32> to vector<128xf32>
    %8 = vector.shape_cast %7 : vector<128xf32> to vector<128x1xf32>
    %cst_6 = arith.constant 1.000000e-24 : f32
    %9 = vector.broadcast %cst_6 : f32 to vector<128x1xf32>
    %10 = arith.maximumf %8, %9 : vector<128x1xf32>
    %11 = math.rsqrt %10 : vector<128x1xf32>
    %12 = vector.broadcast %11 : vector<128x1xf32> to vector<128x128xf32>
    %13 = arith.mulf %5, %12 : vector<128x128xf32>
    %c0_7 = arith.constant 0 : index
    %c0_8 = arith.constant 0 : index
    %14 = vector.load %arg4[%c0_7, %c0_8] : memref<128x128xf32, #tpu.memory_space<vmem>>, vector<128x128xf32>
    tpu.vector_store %arg4[%c0_7, %c0_8], %13 {strides = array<i32>} : memref<128x128xf32, #tpu.memory_space<vmem>>, vector<128x128xf32>,
    return
  }
  func.func @transform_0(%arg0: i32) -> (i32, i32) {
    %c0_i32 = arith.constant 0 : i32
    %c0_i32_0 = arith.constant 0 : i32
    return %arg0, %c0_i32 : i32, i32
  }
  func.func @transform_1(%arg0: i32) -> (i32, i32) {
    %c0_i32 = arith.constant 0 : i32
    %c0_i32_0 = arith.constant 0 : i32
    %c0_i32_1 = arith.constant 0 : i32
    return %c0_i32, %c0_i32_0 : i32, i32
  }
  func.func @transform_2(%arg0: i32) -> (i32, i32) {
    %c0_i32 = arith.constant 0 : i32
    %c0_i32_0 = arith.constant 0 : i32
    %c0_i32_1 = arith.constant 0 : i32
    return %c0_i32, %c0_i32_0 : i32, i32
  }
  func.func @transform_3(%arg0: i32) -> (i32, i32) {
    %c0_i32 = arith.constant 0 : i32
    %c0_i32_0 = arith.constant 0 : i32
    return %arg0, %c0_i32 : i32, i32
  }
}

</mosaic_0001>

<bundles_post_ra>
// kernel: tpu_custom_call.1
= control target key start
LH: loop header
LB: loop body
LE: loop exit
PB: predicated region body
PF: predicated region fallthrough
CT: control target
= control target key end

     0   :  { %8 = vsyncpa [#allocation3], 0  ;;  %s1391_s0 = inlined_call_operand.hbm [shape: f32[256,256], index: 0, kind: input, shape index: {}]   ;;  %s1392_s1 = inlined_call_operand.hbm [shape: f32[256,128], index: 1, kind: input, shape index: {}]   ;;  %s1393_s2 = inlined_call_operand.vmem [shape: f32[1,128], index: 2, kind: input, shape index: {}]   ;;  %s1394_s3 = inlined_call_operand.hbm [shape: f32[256,128], index: 3, kind: output, shape index: {}]  }
   0x1   :  { %10 = vsyncpa [#allocation3 + $0x1], 0 }
   0x2   :  { %11 = vsyncpa [#allocation6], 0 }
   0x3   :  { %12 = vsyncpa [#allocation4], 0 }
   0x4   :  { %14 = vsyncpa [#allocation4 + $0x1], 0  ;;  %s1035_s12 = smov 0   ;;  %s1037_s13 = smov 0  }
   0x5   :  { %s1039_s14 = smov 0   ;;  %s1041_s15 = smov 0  }
   0x6 LB: > { %s1056_s16 = sadd.s32 4294967295, %s1004_s15   ;;  %s632_s17 = sadd.s32 4294967294, %s1004_s15   ;;  %s1004_s15 = sphi %s1041_s15, %s1414_s15   ;;  %s1000_s14 = sphi %s1039_s14, %s1413_s14   ;;  %s996_s13 = sphi %s1037_s13, %s1412_s13   ;;  %s992_s12 = sphi %s1035_s12, %s1411_s12  }
   0x7   : > { %p40_p0 = scmp.ne.s32.totalorder %s996_s13, %s992_s12  ;;  %p1395_p1 = scmp.eq.s32.totalorder %s1056_s16, 0 }
   0x8   : > { %p112_p3 = scmp.eq.s32.totalorder %s632_s17, 1  ;;  %p633_p5 = scmp.ge.s32.totalorder %s1004_s15, 1 }
   0x9   : > { %p1065_p4 = por %p1395_p1, %p40_p0  ;;  %p119_p7 = scmp.lt.s32.totalorder %s1004_s15, 3 }
   0xa   : > { %p1070_p6 = por %p112_p3, %p40_p0  ;;  %s1006_s21 = smov [#allocation5]  }
   0xb   : > { %s1398_s18 = scalar_select %p1065_p4, 1, 0 }
   0xc   : > { %s1399_s19 = scalar_select %p1070_p6, 1, 0 }
   0xd   : > { %p1075_p8 = pnand %p633_p5, %p119_p7  ;;  %s131_s22 = sshll.u32 %s1006_s21, 4  ;;  %s1079_s22 = int_to_ptr.vmem [resolvable:$true] %s131_s22 }
   0xe   : > { %s1091_s24 = sadd.s32 1, %s1004_s15   ;;  %s27_s25 = sadd.s32 1, %s1000_s14 }
   0xf   : > { %s1400_s20 = scalar_select %p1075_p8, 1, 0 }
  0x10   : > { %p789_p9 = pneg %p1075_p8  ;;  %s24_s26 = ssub.s32 %s1004_s15, %s1091_s24 }
  0x11   : > { %s876_s29 = scalar_lea.hbm %s1392_s1, 4096 }
  0x12   : > { %p1086_p11 = pnand %p789_p9, %p1395_p1  ;;  %p877_p12 = scmp.ne.s32.totalorder %s1392_s1, %s876_s29 }
  0x13   : > { %p883_p5 = scmp.lt.u32.totalorder %s876_s29, %s1392_s1 }
  0x14   : > { %p878_p13 = pneg %p1086_p11 }
  0x16   : > { %p879_p0 = pnand %p878_p13, %p877_p12 }
  0x18   : > { %p880_p3 = pneg %p879_p0 }
  0x1a   : > { %p885_p7 = pnand %p883_p5, %p880_p3 }
  0x1c   : > { %888 = shalt.err (!%p885_p7)
}
  0x1d   : > { %s889_s7 = scalar_lea.vmem %s1079_s22, 4096  ;;  %p897_p2 = scmp.lt.s32.totalorder %s1079_s22, %s1079_s22 }
  0x1e   : > { %p890_p9 = scmp.ne.s32.totalorder %s1079_s22, %s889_s7  ;;  %p898_p6 = scmp.lt.s32.totalorder %s889_s7, %s889_s7 }
  0x20   : > { %p892_p10 = pnand %p890_p9, %p878_p13  ;;  %p899_p4 = por %p898_p6, %p897_p2 }
  0x22   : > { %p893_p1 = pneg %p892_p10 }
  0x24   : > { %p900_p8 = pnand %p899_p4, %p893_p1 }
  0x26   : > { %903 = shalt.err (!%p900_p8)
}
  0x27   : > { %s1007_s8 = smov 128   ;;  %s1008_s9 = smov 8  }
  0x28   : > { %792 = dma.hbm_to_vmem [thread:$0]  (!%p1086_p11), %s1392_s1, 4096, %s1079_s22, [#allocation6], %s1007_s8, %s1007_s8, %s1008_s9  }
  0x29   : > { %p25_p2 = scmp.eq.s32.totalorder %s24_s26, 0  ;;  %p34_p1 = scmp.ne.s32.totalorder %s1000_s14, %s996_s13 }
  0x2a   : > { %p35_p4 = scmp.eq.s32.totalorder %s1004_s15, 0  ;;  %p802_p6 = scmp.lt.s32.totalorder %s1004_s15, 2 }
  0x2b   : > { %s1122_s17 = scalar_select %p25_p2, %s1000_s14, %s27_s25  }
  0x2c   : > { %p36_p8 = por %p35_p4, %p34_p1  ;;  %p1402_p10 = scmp.eq.s32.totalorder %s1056_s16, 1 }
  0x2d   : > { %s148_s27 = sand.u32 1, %s1000_s14   ;;  %s651_s28 = sshll.u32 %s1004_s15, 12 }
  0x2e   : > { %p1126_p12 = por %p1402_p10, %p34_p1  ;;  %s636_s29 = sshll.u32 %s148_s27, 8 }
  0x2f   : > { %s1135_s4 = scalar_lea.hbm %s1391_s0, %s651_s28  ;;  %s152_s22 = scalar_lea.vmem [#allocation2], %s636_s29 }
  0x30   : > { %s160_s25 = sshll.u32 %s152_s22, 4  ;;  %p1137_p11 = pnand %p802_p6, %p36_p8  ;;  %s1141_s25 = int_to_ptr.vmem [resolvable:$true] %s160_s25 }
  0x31   : > { %s1143_s5 = scalar_lea.sflag [#allocation3], %s148_s27  ;;  %s904_s6 = scalar_lea.hbm %s1135_s4, 4096 }
  0x32   : > { %p905_p13 = scmp.ne.s32.totalorder %s1135_s4, %s904_s6  ;;  %p906_p0 = pneg %p1137_p11 }
  0x33   : > { %s909_s9 = scalar_lea.hbm %s1391_s0, 8192  ;;  %p910_p7 = scmp.lt.u32.totalorder %s1135_s4, %s1391_s0 }
  0x34   : > { %p907_p3 = pnand %p906_p0, %p905_p13  ;;  %p911_p9 = scmp.lt.u32.totalorder %s909_s9, %s904_s6 }
  0x35   : > { %p913_p1 = scmp.lt.u32.totalorder %s904_s6, %s1135_s4 }
  0x36   : > { %p908_p5 = pneg %p907_p3  ;;  %p912_p2 = por %p911_p9, %p910_p7 }
  0x38   : > { %p914_p4 = por %p913_p1, %p912_p2 }
  0x3a   : > { %p915_p6 = pnand %p914_p4, %p908_p5 }
  0x3c   : > { %918 = shalt.err (!%p915_p6)
}
  0x3d   : > { %s919_s27 = scalar_lea.vmem %s1141_s25, 4096  ;;  %s1009_s28 = smov [#allocation2]  }
  0x3e   : > { %p920_p8 = scmp.ne.s32.totalorder %s1141_s25, %s919_s27  ;;  %s924_s29 = sshll.u32 %s1009_s28, 4  ;;  %s925_s29 = int_to_ptr.vmem [resolvable:$false] %s924_s29 }
  0x3f   : > { %s926_s23 = scalar_lea.vmem %s925_s29, 8192  ;;  %p927_p3 = scmp.lt.s32.totalorder %s1141_s25, %s925_s29 }
  0x40   : > { %p922_p10 = pnand %p920_p8, %p906_p0  ;;  %p928_p7 = scmp.lt.s32.totalorder %s926_s23, %s919_s27 }
  0x42   : > { %p923_p13 = pneg %p922_p10  ;;  %p929_p9 = por %p928_p7, %p927_p3 }
  0x44   : > { %p930_p2 = pnand %p929_p9, %p923_p13 }
  0x46   : > { %933 = shalt.err (!%p930_p2)
}
  0x47   : > { %s1010_s30 = smov 256   ;;  %s1011_s22 = smov 16  }
  0x48   : > { %796 = dma.hbm_to_vmem [thread:$0]  (!%p1137_p11), %s1135_s4, 4096, %s1141_s25, %s1143_s5, %s1010_s30, %s1010_s30, %s1011_s22  }
  0x49   : > { %p1405_p0 = scmp.ne.s32.totalorder %s1400_s20, 0 }
  0x4a   : > { %s1174_s6 = sand.u32 (!%p1405_p0), 1, %s996_s13   ;;  %p1406_p5 = scmp.ne.s32.totalorder (!%p1405_p0), %s1398_s18, 0 }
  0x4b   : > { %172 = sbr.rel (%p1405_p0) target bundleno = 544 (0x220), region = 32  ;;  %s641_s7 = sshll.u32 (!%p1405_p0), %s1174_s6, 8 }
  0x4c   : > { %s175_s8 = scalar_lea.sflag (!%p1405_p0), [#allocation3], %s1174_s6  ;;  %s1178_s9 = scalar_lea.vmem (!%p1405_p0), [#allocation2], %s641_s7 }
  0x52   : > { %979 = dma.done.wait (%p1406_p5), %s175_s8, 4096  }
  0x53   : > { %981 = vsyncadd (%p1406_p5), %s175_s8, 4294963200  ;;  %p1407_p11 = scmp.eq.s32.totalorder %s1056_s16, 0 }
  0x55   : > { %983 = dma.done.wait (%p1407_p11), [#allocation6], 4096   ;;  %p1408_p1 = pmov %p1407_p11 }
  0x56   : > { %v255_v0 = vld [vmem:[#allocation5 + $0x80] sm:$0xff]  ;;  %v256_v1 = vld [vmem:[#allocation5 + $0x88] sm:$0xff]  ;;  %v257_v5 = vld [vmem:[#allocation5 + $0x90] sm:$0xff]  ;;  %s643_s4 = sshll.u32 %s1174_s6, 7  ;;  %s652_s26 = sshll.u32 %s1056_s16, 11 }
  0x57   : > { %985 = vsyncadd (%p1408_p1), [#allocation6], 4294963200  ;;  %v239_v2 = vld [vmem:[#allocation5] sm:$0xff]  ;;  %v733_v3 = vpack.c.bf16 %v256_v1, %v255_v0  ;;  %v240_v4 = vld [vmem:[#allocation5 + $0x8] sm:$0xff]  ;;  %s1307_s25 = scalar_lea.vmem [#allocation7], %s643_s4  ;;  %s1343_s27 = scalar_lea.hbm %s1394_s3, %s652_s26 }
  0x58   : > { %v258_v6 = vld [vmem:[#allocation5 + $0x98] sm:$0xff]  ;;  %v735_v7 = vpack.c.bf16 %v240_v4, %v239_v2  ;;  %v241_v9 = vld [vmem:[#allocation5 + $0x10] sm:$0xff]  ;;  %v259_v11 = vld [vmem:[#allocation5 + $0xa0] sm:$0xff]  ;;  %s549_s5 = sshll.u32 %s1307_s25, 4  ;;  %s536_s16 = scalar_lea.sflag [#allocation4], %s1174_s6  ;;  %s1345_s5 = int_to_ptr.vmem [resolvable:$true] %s549_s5 }
  0x59   : > { %v737_v8 = vpack.c.bf16 %v258_v6, %v257_v5  ;;  %v242_v10 = vld [vmem:[#allocation5 + $0x18] sm:$0xff]  ;;  %734 = vmatprep.subr.bf16.mxu0 %v733_v3  ;;  %765 = vmatprep.subr.bf16.mxu1 %v733_v3  ;;  %v260_v12 = vld [vmem:[#allocation5 + $0xa8] sm:$0xff]  ;;  %v243_v15 = vld [vmem:[#allocation5 + $0x20] sm:$0xff]  ;;  %s934_s28 = scalar_lea.vmem %s1345_s5, 2048  ;;  %s1012_s29 = smov [#allocation7]  }
  0x5a   : > { %736 = vmatpush3.bf16.msra.mxu0 %v735_v7  ;;  %773 = vmatpush3.bf16.msra.mxu1 %v735_v7  ;;  %v739_v13 = vpack.c.bf16 %v242_v10, %v241_v9  ;;  %v741_v14 = vpack.c.bf16 %v260_v12, %v259_v11  ;;  %v244_v16 = vld [vmem:[#allocation5 + $0x28] sm:$0xff]  ;;  %v261_v17 = vld [vmem:[#allocation5 + $0xb0] sm:$0xff]  ;;  %v262_v18 = vld [vmem:[#allocation5 + $0xb8] sm:$0xff]  ;;  %p935_p4 = scmp.ne.s32.totalorder %s1345_s5, %s934_s28  ;;  %s938_s23 = sshll.u32 %s1012_s29, 4  ;;  %s939_s23 = int_to_ptr.vmem [resolvable:$false] %s938_s23 }
  0x5b   : > { %738 = vmatprep.subr.bf16.mxu0 %v737_v8  ;;  %766 = vmatprep.subr.bf16.mxu1 %v737_v8  ;;  %v743_v19 = vpack.c.bf16 %v244_v16, %v243_v15  ;;  %v745_v20 = vpack.c.bf16 %v262_v18, %v261_v17  ;;  %v245_v21 = vld [vmem:[#allocation5 + $0x30] sm:$0xff]  ;;  %v246_v22 = vld [vmem:[#allocation5 + $0x38] sm:$0xff]  ;;  %v263_v23 = vld [vmem:[#allocation5 + $0xc0] sm:$0xff]  ;;  %s940_s30 = scalar_lea.vmem %s939_s23, 4096  ;;  %p941_p10 = scmp.lt.s32.totalorder %s1345_s5, %s939_s23 }
  0x5c   : > { %v264_v24 = vld [vmem:[#allocation5 + $0xc8] sm:$0xff]  ;;  %v747_v27 = vpack.c.bf16 %v246_v22, %v245_v21  ;;  %v247_v29 = vld [vmem:[#allocation5 + $0x40] sm:$0xff]  ;;  %v265_v31 = vld [vmem:[#allocation5 + $0xd0] sm:$0xff]  ;;  %p936_p6 = pnand %p935_p4, %p1126_p12  ;;  %p942_p13 = scmp.lt.s32.totalorder %s940_s30, %s934_s28 }
  0x5d   : > { %v208_v25 = vld [vmem:[%s1178_s9 + $0x8] sm:$0xff]  ;;  %v749_v28 = vpack.c.bf16 %v264_v24, %v263_v23  ;;  %v266_v32 = vld [vmem:[#allocation5 + $0xd8] sm:$0xff]  ;;  %v249_v35 = vld [vmem:[#allocation5 + $0x50] sm:$0xff] }
  0x5e   : > { %740 = vmatpush3.bf16.msra.mxu0 %v739_v13  ;;  %774 = vmatpush3.bf16.msra.mxu1 %v739_v13  ;;  %v224_v26 = vld [vmem:[%s1178_s9 + $0x88] sm:$0xff]  ;;  %v753_v34 = vpack.c.bf16 %v266_v32, %v265_v31  ;;  %v250_v36 = vld [vmem:[#allocation5 + $0x58] sm:$0xff]  ;;  %v267_v37 = vld [vmem:[#allocation5 + $0xe0] sm:$0xff]  ;;  %p937_p8 = pneg %p936_p6  ;;  %p943_p3 = por %p942_p13, %p941_p10 }
  0x5f   : > { %742 = vmatprep.subr.bf16.mxu0 %v741_v14  ;;  %767 = vmatprep.subr.bf16.mxu1 %v741_v14  ;;  %v248_v30 = vld [vmem:[#allocation5 + $0x48] sm:$0xff]  ;;  %v755_v39 = vpack.c.bf16 %v250_v36, %v249_v35  ;;  %v251_v41 = vld [vmem:[#allocation5 + $0x60] sm:$0xff]  ;;  %v269_v43 = vld [vmem:[#allocation5 + $0xf0] sm:$0xff] }
  0x60   : > { %342 = vmatprep.mubr.f32.mxu0 %v208_v25  ;;  %382 = vmatprep.mubr.f32.mxu1 %v224_v26  ;;  %v751_v33 = vpack.c.bf16 %v248_v30, %v247_v29  ;;  %v268_v38 = vld [vmem:[#allocation5 + $0xe8] sm:$0xff]  ;;  %v270_v44 = vld [vmem:[#allocation5 + $0xf8] sm:$0xff]  ;;  %v253_v47 = vld [vmem:[#allocation5 + $0x70] sm:$0xff]  ;;  %p944_p7 = pnand %p943_p3, %p937_p8 }
  0x61   : > { %v757_v40 = vpack.c.bf16 %v268_v38, %v267_v37  ;;  %v252_v42 = vld [vmem:[#allocation5 + $0x68] sm:$0xff]  ;;  %v761_v46 = vpack.c.bf16 %v270_v44, %v269_v43  ;;  %v254_v48 = vld [vmem:[#allocation5 + $0x78] sm:$0xff]  ;;  %v207_v50 = vld [vmem:[%s1178_s9] sm:$0xff] }
  0x62   : > { %744 = vmatpush3.bf16.msra.mxu0 %v743_v19  ;;  %775 = vmatpush3.bf16.msra.mxu1 %v743_v19  ;;  %v759_v45 = vpack.c.bf16 %v252_v42, %v251_v41  ;;  %v763_v49 = vpack.c.bf16 %v254_v48, %v253_v47  ;;  %v223_v51 = vld [vmem:[%s1178_s9 + $0x80] sm:$0xff]  ;;  %v210_v52 = vld [vmem:[%s1178_s9 + $0x18] sm:$0xff]  ;;  %v209_v54 = vld [vmem:[%s1178_s9 + $0x10] sm:$0xff] }
  0x63   : > { %746 = vmatprep.subr.bf16.mxu0 %v745_v20  ;;  %768 = vmatprep.subr.bf16.mxu1 %v745_v20  ;;  %v226_v53 = vld [vmem:[%s1178_s9 + $0x98] sm:$0xff]  ;;  %v225_v55 = vld [vmem:[%s1178_s9 + $0x90] sm:$0xff]  ;;  %v212_v56 = vld [vmem:[%s1178_s9 + $0x28] sm:$0xff] }
  0x64   : > { %v228_v57 = vld [vmem:[%s1178_s9 + $0xa8] sm:$0xff]  ;;  %v211_v58 = vld [vmem:[%s1178_s9 + $0x20] sm:$0xff]  ;;  %v214_v60 = vld [vmem:[%s1178_s9 + $0x38] sm:$0xff] }
  0x65   : > { %v227_v59 = vld [vmem:[%s1178_s9 + $0xa0] sm:$0xff]  ;;  %v230_v61 = vld [vmem:[%s1178_s9 + $0xb8] sm:$0xff]  ;;  %v213_v62 = vld [vmem:[%s1178_s9 + $0x30] sm:$0xff] }
  0x66   : > { %748 = vmatpush3.bf16.msra.mxu0 %v747_v27  ;;  %776 = vmatpush3.bf16.msra.mxu1 %v747_v27  ;;  %v229_v63 = vld [vmem:[%s1178_s9 + $0xb0] sm:$0xff]  ;;  %v216_v0 = vld [vmem:[%s1178_s9 + $0x48] sm:$0xff]  ;;  %v215_v2 = vld [vmem:[%s1178_s9 + $0x40] sm:$0xff] }
  0x67   : > { %750 = vmatprep.subr.bf16.mxu0 %v749_v28  ;;  %769 = vmatprep.subr.bf16.mxu1 %v749_v28  ;;  %v232_v1 = vld [vmem:[%s1178_s9 + $0xc8] sm:$0xff]  ;;  %v231_v3 = vld [vmem:[%s1178_s9 + $0xc0] sm:$0xff]  ;;  %v218_v4 = vld [vmem:[%s1178_s9 + $0x58] sm:$0xff] }
  0x68   : > { %v234_v5 = vld [vmem:[%s1178_s9 + $0xd8] sm:$0xff]  ;;  %v217_v6 = vld [vmem:[%s1178_s9 + $0x50] sm:$0xff]  ;;  %v220_v8 = vld [vmem:[%s1178_s9 + $0x68] sm:$0xff] }
  0x69   : > { %v233_v7 = vld [vmem:[%s1178_s9 + $0xd0] sm:$0xff]  ;;  %v236_v9 = vld [vmem:[%s1178_s9 + $0xe8] sm:$0xff]  ;;  %v219_v10 = vld [vmem:[%s1178_s9 + $0x60] sm:$0xff] }
  0x6a   : > { %752 = vmatpush3.bf16.msra.mxu0 %v751_v33  ;;  %777 = vmatpush3.bf16.msra.mxu1 %v751_v33  ;;  %v235_v11 = vld [vmem:[%s1178_s9 + $0xe0] sm:$0xff]  ;;  %v222_v12 = vld [vmem:[%s1178_s9 + $0x78] sm:$0xff]  ;;  %v221_v14 = vld [vmem:[%s1178_s9 + $0x70] sm:$0xff] }
  0x6b   : > { %754 = vmatprep.subr.bf16.mxu0 %v753_v34  ;;  %770 = vmatprep.subr.bf16.mxu1 %v753_v34  ;;  %v238_v13 = vld [vmem:[%s1178_s9 + $0xf8] sm:$0xff]  ;;  %v237_v15 = vld [vmem:[%s1178_s9 + $0xf0] sm:$0xff]  ;;  %v1223_v19 = vld [vmem:[%s1393_s2] ss:$0 sm:$0xff] }
  0x6e   : > { %756 = vmatpush3.bf16.msra.mxu0 %v755_v39  ;;  %778 = vmatpush3.bf16.msra.mxu1 %v755_v39 }
  0x6f   : > { %758 = vmatprep.subr.bf16.mxu0 %v757_v40  ;;  %771 = vmatprep.subr.bf16.mxu1 %v757_v40 }
  0x72   : > { %760 = vmatpush3.bf16.msra.mxu0 %v759_v45  ;;  %779 = vmatpush3.bf16.msra.mxu1 %v759_v45 }
  0x73   : > { %762 = vmatprep.subr.bf16.mxu0 %v761_v46  ;;  %772 = vmatprep.subr.bf16.mxu1 %v761_v46 }
  0x76   : > { %764 = vmatpush3.bf16.msra.mxu0 %v763_v49  ;;  %780 = vmatpush3.bf16.msra.mxu1 %v763_v49 }
  0x79   : > { %343 = vmatmul.mubr.f32.vlgmr.msra.gmra.mrb[0].mxu0 %v207_v50  ;;  %383 = vmatmul.mubr.f32.vlgmr.msra.gmra.mrb[0].mxu1 %v223_v51 }
  0x7a   : > { %347 = vmatprep.mubr.f32.mxu0 %v210_v52  ;;  %387 = vmatprep.mubr.f32.mxu1 %v226_v53 }
  0x7d   : > { %348 = vmatmul.mubr.f32.gmra.mrb[2].mxu0 %v209_v54  ;;  %388 = vmatmul.mubr.f32.gmra.mrb[2].mxu1 %v225_v55 }
  0x7e   : > { %352 = vmatprep.mubr.f32.mxu0 %v212_v56  ;;  %392 = vmatprep.mubr.f32.mxu1 %v228_v57 }
  0x81   : > { %353 = vmatmul.mubr.f32.gmra.mrb[4].mxu0 %v211_v58  ;;  %393 = vmatmul.mubr.f32.gmra.mrb[4].mxu1 %v227_v59 }
  0x82   : > { %357 = vmatprep.mubr.f32.mxu0 %v214_v60  ;;  %397 = vmatprep.mubr.f32.mxu1 %v230_v61 }
  0x85   : > { %358 = vmatmul.mubr.f32.gmra.mrb[6].mxu0 %v213_v62  ;;  %398 = vmatmul.mubr.f32.gmra.mrb[6].mxu1 %v229_v63 }
  0x86   : > { %362 = vmatprep.mubr.f32.mxu0 %v216_v0  ;;  %402 = vmatprep.mubr.f32.mxu1 %v232_v1 }
  0x89   : > { %363 = vmatmul.mubr.f32.gmra.mrb[8].mxu0 %v215_v2  ;;  %403 = vmatmul.mubr.f32.gmra.mrb[8].mxu1 %v231_v3 }
  0x8a   : > { %367 = vmatprep.mubr.f32.mxu0 %v218_v4  ;;  %407 = vmatprep.mubr.f32.mxu1 %v234_v5 }
  0x8d   : > { %368 = vmatmul.mubr.f32.gmra.mrb[10].mxu0 %v217_v6  ;;  %408 = vmatmul.mubr.f32.gmra.mrb[10].mxu1 %v233_v7 }
  0x8e   : > { %372 = vmatprep.mubr.f32.mxu0 %v220_v8  ;;  %412 = vmatprep.mubr.f32.mxu1 %v236_v9 }
  0x91   : > { %373 = vmatmul.mubr.f32.gmra.mrb[12].mxu0 %v219_v10  ;;  %413 = vmatmul.mubr.f32.gmra.mrb[12].mxu1 %v235_v11 }
  0x92   : > { %377 = vmatprep.mubr.f32.mxu0 %v222_v12  ;;  %417 = vmatprep.mubr.f32.mxu1 %v238_v13 }
  0x95   : > { %378 = vmatmul.mubr.f32.gmra.mrb[14].mxu0 %v221_v14  ;;  %418 = vmatmul.mubr.f32.gmra.mrb[14].mxu1 %v237_v15 }
 0x14c   : > { %v685_v16 = vpop.f32.mrb[0].mxu0  ;;  %v709_v17 = vpop.f32.mrb[0].mxu1 }
 0x14d   : > { %v686_v18 = vpop.f32.mrb[1].mxu0  ;;  %v710_v20 = vpop.f32.mrb[1].mxu1 }
 0x14e   : > { %v687_v21 = vadd.f32 %v686_v18, %v685_v16  ;;  %v711_v22 = vadd.f32 %v710_v20, %v709_v17 }
 0x150   : > { %v688_v23 = vpop.f32.mrb[2].mxu0  ;;  %v712_v24 = vpop.f32.mrb[2].mxu1  ;;  %v1226_v25 = vadd.f32 %v687_v21, %v1223_v19  ;;  %v1229_v26 = vadd.f32 %v711_v22, %v1223_v19 }
 0x151   : > { %v689_v27 = vpop.f32.mrb[3].mxu0  ;;  %v713_v28 = vpop.f32.mrb[3].mxu1 }
 0x152   : > { %v690_v29 = vadd.f32 %v689_v27, %v688_v23  ;;  %v714_v30 = vadd.f32 %v713_v28, %v712_v24  ;;  %v423_v31 = vmul.f32 %v1226_v25, %v1226_v25  ;;  %v431_v37 = vmul.f32 %v1229_v26, %v1229_v26 }
 0x154   : > { %v691_v32 = vpop.f32.mrb[4].mxu0  ;;  %439 = vadd.xlane.f32.xlu0 %v423_v31  ;;  %v715_v33 = vpop.f32.mrb[4].mxu1  ;;  %v1234_v34 = vadd.f32 %v714_v30, %v1223_v19  ;;  %v1239_v38 = vadd.f32 %v690_v29, %v1223_v19 }
 0x155   : > { %v692_v35 = vpop.f32.mrb[5].mxu0  ;;  %v716_v36 = vpop.f32.mrb[5].mxu1 }
 0x156   : > { %v693_v39 = vadd.f32 %v692_v35, %v691_v32  ;;  %v717_v40 = vadd.f32 %v716_v36, %v715_v33  ;;  %v432_v41 = vmul.f32 %v1234_v34, %v1234_v34  ;;  %v424_v51 = vmul.f32 %v1239_v38, %v1239_v38 }
 0x158   : > { %v1244_v42 = vadd.f32 %v693_v39, %v1223_v19  ;;  %v1247_v43 = vadd.f32 %v717_v40, %v1223_v19  ;;  %457 = vadd.xlane.f32.xlu1 %v432_v41  ;;  %v694_v44 = vpop.f32.mrb[6].mxu0  ;;  %455 = vadd.xlane.f32.xlu0 %v431_v37  ;;  %v718_v45 = vpop.f32.mrb[6].mxu1 }
 0x159   : > { %v695_v46 = vpop.f32.mrb[7].mxu0  ;;  %v719_v47 = vpop.f32.mrb[7].mxu1 }
 0x15a   : > { %v696_v48 = vadd.f32 %v695_v46, %v694_v44  ;;  %v720_v49 = vadd.f32 %v719_v47, %v718_v45  ;;  %v425_v50 = vmul.f32 %v1244_v42, %v1244_v42  ;;  %v433_v56 = vmul.f32 %v1247_v43, %v1247_v43 }
 0x15c   : > { %v1254_v52 = vadd.f32 %v696_v48, %v1223_v19  ;;  %v697_v53 = vpop.f32.mrb[8].mxu0  ;;  %v1257_v54 = vadd.f32 %v720_v49, %v1223_v19  ;;  %443 = vadd.xlane.f32.xlu1 %v425_v50  ;;  %441 = vadd.xlane.f32.xlu0 %v424_v51  ;;  %v721_v55 = vpop.f32.mrb[8].mxu1 }
 0x15d   : > { %v698_v57 = vpop.f32.mrb[9].mxu0  ;;  %v722_v58 = vpop.f32.mrb[9].mxu1 }
 0x15e   : > { %v699_v59 = vadd.f32 %v698_v57, %v697_v53  ;;  %v723_v60 = vadd.f32 %v722_v58, %v721_v55  ;;  %v426_v61 = vmul.f32 %v1254_v52, %v1254_v52  ;;  %v434_v2 = vmul.f32 %v1257_v54, %v1257_v54 }
 0x160   : > { %v1264_v62 = vadd.f32 %v699_v59, %v1223_v19  ;;  %v700_v63 = vpop.f32.mrb[10].mxu0  ;;  %v1267_v0 = vadd.f32 %v723_v60, %v1223_v19  ;;  %445 = vadd.xlane.f32.xlu1 %v426_v61  ;;  %459 = vadd.xlane.f32.xlu0 %v433_v56  ;;  %v724_v1 = vpop.f32.mrb[10].mxu1 }
 0x161   : > { %v701_v3 = vpop.f32.mrb[11].mxu0  ;;  %v725_v4 = vpop.f32.mrb[11].mxu1 }
 0x162   : > { %v702_v5 = vadd.f32 %v701_v3, %v700_v63  ;;  %v726_v6 = vadd.f32 %v725_v4, %v724_v1  ;;  %v427_v7 = vmul.f32 %v1264_v62, %v1264_v62  ;;  %v435_v12 = vmul.f32 %v1267_v0, %v1267_v0 }
 0x164   : > { %v1274_v8 = vadd.f32 %v702_v5, %v1223_v19  ;;  %v703_v9 = vpop.f32.mrb[12].mxu0  ;;  %v1277_v10 = vadd.f32 %v726_v6, %v1223_v19  ;;  %461 = vadd.xlane.f32.xlu1 %v434_v2  ;;  %447 = vadd.xlane.f32.xlu0 %v427_v7  ;;  %v727_v11 = vpop.f32.mrb[12].mxu1 }
 0x165   : > { %v704_v13 = vpop.f32.mrb[13].mxu0  ;;  %v728_v14 = vpop.f32.mrb[13].mxu1 }
 0x166   : > { %v705_v15 = vadd.f32 %v704_v13, %v703_v9  ;;  %v729_v16 = vadd.f32 %v728_v14, %v727_v11  ;;  %v428_v17 = vmul.f32 %v1274_v8, %v1274_v8  ;;  %v436_v23 = vmul.f32 %v1277_v10, %v1277_v10 }
 0x168   : > { %v1284_v18 = vadd.f32 %v705_v15, %v1223_v19  ;;  %v706_v20 = vpop.f32.mrb[14].mxu0  ;;  %v1287_v21 = vadd.f32 %v729_v16, %v1223_v19  ;;  %449 = vadd.xlane.f32.xlu1 %v428_v17  ;;  %463 = vadd.xlane.f32.xlu0 %v435_v12  ;;  %v730_v22 = vpop.f32.mrb[14].mxu1 }
 0x169   : > { %v707_v24 = vpop.f32.mrb[15].mxu0  ;;  %v731_v27 = vpop.f32.mrb[15].mxu1 }
 0x16a   : > { %v708_v28 = vadd.f32 %v707_v24, %v706_v20  ;;  %v732_v29 = vadd.f32 %v731_v27, %v730_v22  ;;  %v429_v30 = vmul.f32 %v1284_v18, %v1284_v18  ;;  %v437_v33 = vmul.f32 %v1287_v21, %v1287_v21 }
 0x16c   : > { %v1294_v31 = vadd.f32 %v708_v28, %v1223_v19  ;;  %v1297_v32 = vadd.f32 %v732_v29, %v1223_v19  ;;  %465 = vadd.xlane.f32.xlu1 %v436_v23  ;;  %451 = vadd.xlane.f32.xlu0 %v429_v30 }
 0x16e   : > { %v430_v35 = vmul.f32 %v1294_v31, %v1294_v31  ;;  %v438_v36 = vmul.f32 %v1297_v32, %v1297_v32 }
 0x170   : > { %453 = vadd.xlane.f32.xlu1 %v430_v35  ;;  %467 = vadd.xlane.f32.xlu0 %v437_v33 }
 0x174   : > { %469 = vadd.xlane.f32.xlu1 %v438_v36 }
 0x1e1   : > { %v440_v37 = vpop.xlane.xlu0 %439 }
 0x1e2   : > { %v471_v39 = vmax.f32 %v440_v37, 1e-24 }
 0x1e4   : > { %844 = vrsqrt.f32 %v471_v39 }
 0x1e5   : > { %v458_v19 = vpop.xlane.xlu1 %457  ;;  %v456_v40 = vpop.xlane.xlu0 %455 }
 0x1e6   : > { %v480_v41 = vmax.f32 %v458_v19, 1e-24  ;;  %v479_v44 = vmax.f32 %v456_v40, 1e-24 }
 0x1e8   : > { %846 = vrsqrt.f32 %v480_v41 }
 0x1e9   : > { %848 = vrsqrt.f32 %v479_v44  ;;  %v444_v45 = vpop.xlane.xlu1 %443  ;;  %v442_v46 = vpop.xlane.xlu0 %441 }
 0x1ea   : > { %v473_v47 = vmax.f32 %v444_v45, 1e-24  ;;  %v472_v48 = vmax.f32 %v442_v46, 1e-24 }
 0x1ec   : > { %850 = vrsqrt.f32 %v473_v47 }
 0x1ed   : > { %852 = vrsqrt.f32 %v472_v48  ;;  %v446_v49 = vpop.xlane.xlu1 %445  ;;  %v460_v50 = vpop.xlane.xlu0 %459 }
 0x1ee   : > { %v845_v51 = vpop.eup %844  ;;  %v474_v53 = vmax.f32 %v446_v49, 1e-24  ;;  %v481_v55 = vmax.f32 %v460_v50, 1e-24 }
 0x1ef   : > { %v503_v56 = vmul.f32 %v845_v51, %v1226_v25 }
 0x1f0   : > { %854 = vrsqrt.f32 %v474_v53 }
 0x1f1   : > { %519 = vst [vmem:[%s1307_s25] sm:$0xff] %v503_v56  ;;  %856 = vrsqrt.f32 %v481_v55  ;;  %v462_v57 = vpop.xlane.xlu1 %461  ;;  %v448_v58 = vpop.xlane.xlu0 %447 }
 0x1f2   : > { %v847_v59 = vpop.eup %846  ;;  %v482_v60 = vmax.f32 %v462_v57, 1e-24  ;;  %v475_v61 = vmax.f32 %v448_v58, 1e-24 }
 0x1f3   : > { %v849_v63 = vpop.eup %848  ;;  %v512_v1 = vmul.f32 %v847_v59, %v1234_v34 }
 0x1f4   : > { %v511_v2 = vmul.f32 %v849_v63, %v1229_v26  ;;  %858 = vrsqrt.f32 %v482_v60 }
 0x1f5   : > { %528 = vst [vmem:[%s1307_s25 + $0x48] sm:$0xff] %v512_v1  ;;  %860 = vrsqrt.f32 %v475_v61  ;;  %v450_v25 = vpop.xlane.xlu1 %449  ;;  %v464_v3 = vpop.xlane.xlu0 %463 }
 0x1f6   : > { %v851_v4 = vpop.eup %850  ;;  %527 = vst [vmem:[%s1307_s25 + $0x40] sm:$0xff] %v511_v2  ;;  %v476_v5 = vmax.f32 %v450_v25, 1e-24  ;;  %v483_v6 = vmax.f32 %v464_v3, 1e-24 }
 0x1f7   : > { %v853_v7 = vpop.eup %852  ;;  %v505_v9 = vmul.f32 %v851_v4, %v1244_v42 }
 0x1f8   : > { %v504_v11 = vmul.f32 %v853_v7, %v1239_v38  ;;  %862 = vrsqrt.f32 %v476_v5 }
 0x1f9   : > { %521 = vst [vmem:[%s1307_s25 + $0x10] sm:$0xff] %v505_v9  ;;  %864 = vrsqrt.f32 %v483_v6  ;;  %v466_v26 = vpop.xlane.xlu1 %465  ;;  %v452_v34 = vpop.xlane.xlu0 %451 }
 0x1fa   : > { %v855_v12 = vpop.eup %854  ;;  %520 = vst [vmem:[%s1307_s25 + $0x8] sm:$0xff] %v504_v11  ;;  %v484_v13 = vmax.f32 %v466_v26, 1e-24  ;;  %v477_v14 = vmax.f32 %v452_v34, 1e-24 }
 0x1fb   : > { %v857_v15 = vpop.eup %856  ;;  %v506_v16 = vmul.f32 %v855_v12, %v1254_v52 }
 0x1fc   : > { %v513_v17 = vmul.f32 %v857_v15, %v1247_v43  ;;  %866 = vrsqrt.f32 %v484_v13 }
 0x1fd   : > { %522 = vst [vmem:[%s1307_s25 + $0x18] sm:$0xff] %v506_v16  ;;  %868 = vrsqrt.f32 %v477_v14  ;;  %v454_v38 = vpop.xlane.xlu1 %453  ;;  %v468_v42 = vpop.xlane.xlu0 %467 }
 0x1fe   : > { %v859_v20 = vpop.eup %858  ;;  %529 = vst [vmem:[%s1307_s25 + $0x50] sm:$0xff] %v513_v17  ;;  %v478_v22 = vmax.f32 %v454_v38, 1e-24  ;;  %v485_v23 = vmax.f32 %v468_v42, 1e-24 }
 0x1ff   : > { %v861_v24 = vpop.eup %860  ;;  %v514_v27 = vmul.f32 %v859_v20, %v1257_v54 }
 0x200   : > { %v507_v28 = vmul.f32 %v861_v24, %v1264_v62  ;;  %870 = vrsqrt.f32 %v478_v22 }
 0x201   : > { %530 = vst [vmem:[%s1307_s25 + $0x58] sm:$0xff] %v514_v27  ;;  %872 = vrsqrt.f32 %v485_v23  ;;  %v470_v43 = vpop.xlane.xlu1 %469 }
 0x202   : > { %v863_v52 = vpop.eup %862  ;;  %523 = vst [vmem:[%s1307_s25 + $0x20] sm:$0xff] %v507_v28  ;;  %v486_v29 = vmax.f32 %v470_v43, 1e-24 }
 0x203   : > { %v865_v30 = vpop.eup %864  ;;  %v508_v33 = vmul.f32 %v863_v52, %v1274_v8 }
 0x204   : > { %v515_v35 = vmul.f32 %v865_v30, %v1267_v0  ;;  %874 = vrsqrt.f32 %v486_v29 }
 0x205   : > { %524 = vst [vmem:[%s1307_s25 + $0x28] sm:$0xff] %v508_v33 }
 0x206   : > { %v867_v54 = vpop.eup %866  ;;  %531 = vst [vmem:[%s1307_s25 + $0x60] sm:$0xff] %v515_v35 }
 0x207   : > { %v869_v62 = vpop.eup %868  ;;  %v516_v36 = vmul.f32 %v867_v54, %v1277_v10 }
 0x208   : > { %v509_v37 = vmul.f32 %v869_v62, %v1284_v18 }
 0x209   : > { %532 = vst [vmem:[%s1307_s25 + $0x68] sm:$0xff] %v516_v36 }
 0x20a   : > { %v871_v39 = vpop.eup %870  ;;  %525 = vst [vmem:[%s1307_s25 + $0x30] sm:$0xff] %v509_v37 }
 0x20b   : > { %v873_v8 = vpop.eup %872  ;;  %v510_v0 = vmul.f32 %v871_v39, %v1294_v31 }
 0x20c   : > { %v517_v19 = vmul.f32 %v873_v8, %v1287_v21 }
 0x20d   : > { %526 = vst [vmem:[%s1307_s25 + $0x38] sm:$0xff] %v510_v0 }
 0x20e   : > { %v875_v40 = vpop.eup %874  ;;  %533 = vst [vmem:[%s1307_s25 + $0x70] sm:$0xff] %v517_v19 }
 0x20f   : > { %v518_v10 = vmul.f32 %v875_v40, %v1297_v32 }
 0x211   : > { %534 = vst [vmem:[%s1307_s25 + $0x78] sm:$0xff] %v518_v10 }
 0x212   : > { %947 = shalt.err (!%p944_p7)
}
 0x213   : > { %s948_s22 = scalar_lea.hbm %s1343_s27, 2048  ;;  %s952_s9 = scalar_lea.hbm %s1394_s3, 4096 }
 0x214   : > { %p949_p9 = scmp.ne.s32.totalorder %s1343_s27, %s948_s22  ;;  %p953_p5 = scmp.lt.u32.totalorder %s1343_s27, %s1394_s3 }
 0x215   : > { %p954_p11 = scmp.lt.u32.totalorder %s952_s9, %s948_s22  ;;  %p956_p4 = scmp.lt.u32.totalorder %s948_s22, %s1343_s27 }
 0x216   : > { %p950_p2 = pnand %p949_p9, %p1126_p12 }
 0x217   : > { %p955_p1 = por %p954_p11, %p953_p5 }
 0x218   : > { %p951_p0 = pneg %p950_p2 }
 0x219   : > { %p957_p6 = por %p956_p4, %p955_p1 }
 0x21b   : > { %p958_p8 = pnand %p957_p6, %p951_p0 }
 0x21d   : > { %961 = shalt.err (!%p958_p8)
}
 0x21e   : > { %s1013_s4 = smov 128   ;;  %s1014_s25 = smov 8  }
 0x21f   : > { %787 = dma.vmem_to_hbm [thread:$0]  (%p1126_p12), %s1345_s5, 2048, %s1343_s27, %s536_s16, %s1013_s4, %s1013_s4, %s1014_s25  }
 0x220 PF: > { %s564_s26 = sand.u32 1, %s992_s12   ;;  %p1409_p10 = scmp.ne.s32.totalorder %s1399_s19, 0 }
 0x221   : > { %p1410_p13 = scmp.ge.s32.totalorder %s1004_s15, 2  ;;  %s565_s10 = scalar_lea.sflag [#allocation4], %s564_s26 }
 0x223   : > { %p798_p3 = pnand %p1410_p13, %p1409_p10 }
 0x225   : > { %987 = dma.done.wait (!%p798_p3), %s565_s10, 2048  }
 0x226   : > { %989 = vsyncadd (!%p798_p3), %s565_s10, 4294965248  ;;  %p17_p7 = scmp.ge.s32.totalorder %s1091_s24, 4   ;;  %s1411_s12 = smov %s996_s13 }
 0x227   : > { %s1412_s13 = smov %s1000_s14  ;;  %s1413_s14 = smov %s1122_s17 }
 0x228   : > { %s1414_s15 = smov %s1091_s24  ;;  %19 = sbr.rel (!%p17_p7) target bundleno = 6 (0x6), region = 81 }
 0x22f   :  { %570 = vsyncpa [#allocation3], 1 }
 0x230   :  { %572 = vsyncpa [#allocation3 + $0x1], 1 }
 0x231   :  { %573 = vsyncpa [#allocation6], 1 }
 0x232   :  { %574 = vsyncpa [#allocation4], 1 }
 0x233   :  { %576 = vsyncpa [#allocation4 + $0x1], 1 }

</bundles_post_ra>
